<compile_context>
chip_gen: v5e
topology: v5e:2x2
jax: 0.10.0
libtpu: 0.0.40
codegen_flags: <defaults>
</compile_context>

<pallas_src>
import functools

import numpy as np
import jax
import jax.numpy as jnp
from jax import lax
from jax.experimental import pallas as pl
from jax.experimental.pallas import tpu as pltpu

# logit_scale = torch.ones([]) * np.log(1/0.07)   (NOT exp'd in the reference)
LOGIT_SCALE = float(np.log(1.0 / 0.07))


def _clip_loss_kernel(img_ref, txt_ref, out_ref, acc_ref, *, tm, n_rows,
                      precision):
    i = pl.program_id(0)

    @pl.when(i == 0)
    def _():
        acc_ref[...] = jnp.zeros_like(acc_ref)

    row0 = pl.multiple_of(i * tm, tm)
    img_tile = img_ref[pl.ds(row0, tm), :]            # (tm, D), native dtype
    txt_tile = txt_ref[pl.ds(row0, tm), :]            # (tm, D), native dtype

    # Fold the logit scale into the small (tm, D) operand.
    scale = jnp.asarray(LOGIT_SCALE, dtype=img_tile.dtype)
    dn = (((1,), (1,)), ((), ()))                      # A @ B.T
    s_img = lax.dot_general(img_tile * scale, txt_ref[...], dn,
                            precision=precision,
                            preferred_element_type=jnp.float32)   # (tm, N)
    s_txt = lax.dot_general(txt_tile * scale, img_ref[...], dn,
                            precision=precision,
                            preferred_element_type=jnp.float32)   # (tm, N)

    def sum_lse_rows(x):                               # sum_rows logsumexp(row)
        m = jnp.max(x, axis=-1, keepdims=True)
        lse = m + jnp.log(jnp.sum(jnp.exp(x - m), axis=-1, keepdims=True))
        return jnp.sum(lse, axis=0, keepdims=True)     # (1, 1) f32

    # Diagonal of the scaled logits for these rows, straight from the (tm, D)
    # tiles (same rows on both sides, so one term serves both losses).
    diag = jnp.sum(img_tile.astype(jnp.float32) * txt_tile.astype(jnp.float32),
                   axis=-1, keepdims=True)             # (tm, 1)
    diag_sum = jnp.float32(LOGIT_SCALE) * jnp.sum(diag, axis=0, keepdims=True)

    acc_ref[...] = acc_ref[...] + (sum_lse_rows(s_img) + sum_lse_rows(s_txt)
                                   - 2.0 * diag_sum)

    @pl.when(i == pl.num_programs(0) - 1)
    def _():
        # loss = (loss_a + loss_b)/2 = (sum lse_i + sum lse_t - 2 sum diag)/(2N)
        out_ref[...] = acc_ref[...] * jnp.float32(0.5 / n_rows)


def _pick_block_rows(n):
    # Keep the two live (TM, N) f32 logits slabs <= ~12 MiB so the kernel fits
    # inside the 32 MiB scoped-VMEM default on every generation (incl. v7x).
    budget_rows = max(8, (12 * 1024 * 1024) // (8 * n))
    for cand in (1024, 512, 256, 128, 64, 32, 16, 8):
        if cand <= budget_rows and n % cand == 0:
            return cand
    return n  # fall back to a single tile (grid of 1)


def clip_loss(image_features, text_features, *, block_rows=None,
              precision=None):
    n, d = image_features.shape
    assert text_features.shape == (n, d)

    if precision is None:
        # Exact f32 logits for f32 inputs (matches the exact-f32 diagonal);
        # bf16/other narrow inputs keep the full-rate MXU path.
        precision = (lax.Precision.HIGHEST
                     if image_features.dtype == jnp.float32
                     else lax.Precision.DEFAULT)

    tm = min(block_rows if block_rows is not None else _pick_block_rows(n), n)
    num_tiles = pl.cdiv(n, tm)

    kernel = functools.partial(_clip_loss_kernel, tm=tm, n_rows=n,
                               precision=precision)

    out = pl.pallas_call(
        kernel,
        out_shape=jax.ShapeDtypeStruct((1, 1), jnp.float32),
        grid_spec=pltpu.PrefetchScalarGridSpec(
            num_scalar_prefetch=0,
            grid=(num_tiles,),
            in_specs=[
                pl.BlockSpec((n, d), lambda i: (0, 0)),  # image feats, resident
                pl.BlockSpec((n, d), lambda i: (0, 0)),  # text  feats, resident
            ],
            out_specs=pl.BlockSpec((1, 1), lambda i: (0, 0)),
            scratch_shapes=[pltpu.VMEM((1, 1), jnp.float32)],
        ),
        compiler_params=pltpu.CompilerParams(
            dimension_semantics=("arbitrary",)),
    )(image_features, text_features)
    return out[0, 0]


def _clip_loss_ref(image_features, text_features):
    # Pure-JAX reference mirroring the PyTorch forward (kl_div against an
    # identity target reduces to -trace(log_softmax)/N per direction).
    hi = lax.Precision.HIGHEST
    logits_i = LOGIT_SCALE * jnp.matmul(image_features, text_features.T,
                                        precision=hi)
    logits_t = LOGIT_SCALE * jnp.matmul(text_features, image_features.T,
                                        precision=hi)
    n = logits_i.shape[0]
    lsm_i = jax.nn.log_softmax(logits_i, axis=-1)
    lsm_t = jax.nn.log_softmax(logits_t, axis=-1)
    loss_a = -jnp.trace(lsm_i) / n
    loss_b = -jnp.trace(lsm_t) / n
    return (loss_a + loss_b) / 2


if __name__ == "__main__":
    key = jax.random.PRNGKey(0)
    k1, k2 = jax.random.split(key)
    N, D = 16, 32  # num_logits (batch) = 16, embedding dim = 32
    image_features = jax.random.normal(k1, (N, D), dtype=jnp.float32)
    text_features = jax.random.normal(k2, (N, D), dtype=jnp.float32)

    # block_rows=8 forces a 2-step grid so the accumulator path is exercised.
    loss = clip_loss(image_features, text_features, block_rows=8)
    jax.block_until_ready(loss)

    ref = _clip_loss_ref(image_features, text_features)
    assert jnp.allclose(loss, ref, rtol=1e-4, atol=1e-4), (loss, ref)

    print("KERNEL_OK")
</pallas_src>

<mosaic_0001>
module attributes {stable_mosaic.version = 11 : i64} {
  func.func @_clip_loss_kernel(%arg0: i32, %arg1: memref<16x32xf32, #tpu.memory_space<vmem>>, %arg2: memref<16x32xf32, #tpu.memory_space<vmem>>, %arg3: memref<1x1xf32, #tpu.memory_space<vmem>>, %arg4: memref<1x1xf32, #tpu.memory_space<vmem>>) attributes {dimension_semantics = [#tpu.dimension_semantics<arbitrary>], iteration_bounds = array<i64: 2>, scalar_prefetch = 0 : i64, scratch_operands = 1 : i64, tpu.core_type = #tpu.core_type<tc>, window_params = [{pipeline_mode = #tpu.pipeline_mode<synchronous>, transform_indices = @transform_0, window_bounds = array<i64: 16, 32>}, {pipeline_mode = #tpu.pipeline_mode<synchronous>, transform_indices = @transform_1, window_bounds = array<i64: 16, 32>}, {pipeline_mode = #tpu.pipeline_mode<synchronous>, transform_indices = @transform_2, window_bounds = array<i64: 1, 1>}]} {
    %c0_i32 = arith.constant 0 : i32
    %0 = arith.cmpi eq, %arg0, %c0_i32 : i32
    %1 = arith.extui %0 : i1 to i32
    %c0_i32_0 = arith.constant 0 : i32
    %2 = arith.cmpi ne, %1, %c0_i32_0 : i32
    scf.if %2 {
      %cst_24 = arith.constant 0.000000e+00 : f32
      %56 = vector.broadcast %cst_24 : f32 to vector<1x1xf32>
      %c0_25 = arith.constant 0 : index
      %c0_26 = arith.constant 0 : index
      %57 = vector.load %arg4[%c0_25, %c0_26] : memref<1x1xf32, #tpu.memory_space<vmem>>, vector<1x1xf32>
      tpu.vector_store %arg4[%c0_25, %c0_26], %56 {strides = array<i32>} : memref<1x1xf32, #tpu.memory_space<vmem>>, vector<1x1xf32>,
    } else {
    }
    %c8_i32 = arith.constant 8 : i32
    %3 = arith.muli %arg0, %c8_i32 : i32
    %4 = tpu.assume_multiple %3, 8 : i32
    %5 = arith.index_cast %4 : i32 to index
    %c0 = arith.constant 0 : index
    %6 = vector.load %arg1[%5, %c0] : memref<16x32xf32, #tpu.memory_space<vmem>>, vector<8x32xf32>
    %7 = arith.index_cast %4 : i32 to index
    %c0_1 = arith.constant 0 : index
    %8 = vector.load %arg2[%7, %c0_1] : memref<16x32xf32, #tpu.memory_space<vmem>>, vector<8x32xf32>
    %cst = arith.constant 2.659260e+00 : f32
    %9 = vector.broadcast %cst : f32 to vector<8x32xf32>
    %10 = arith.mulf %6, %9 : vector<8x32xf32>
    %c0_2 = arith.constant 0 : index
    %c0_3 = arith.constant 0 : index
    %11 = vector.load %arg2[%c0_2, %c0_3] : memref<16x32xf32, #tpu.memory_space<vmem>>, vector<16x32xf32>
    %cst_4 = arith.constant dense<0.000000e+00> : vector<8x16xf32>
    %12 = tpu.matmul %10, %11, %cst_4 {dimension_numbers = #tpu.dot_dimension_numbers<[1], [1], [0], [0], [0, 0, 1, 0], [], []>, precision = #tpu.contract_precision<fp32>} : vector<8x32xf32>, vector<16x32xf32>, vector<8x16xf32> -> vector<8x16xf32>
    %cst_5 = arith.constant 2.659260e+00 : f32
    %13 = vector.broadcast %cst_5 : f32 to vector<8x32xf32>
    %14 = arith.mulf %8, %13 : vector<8x32xf32>
    %c0_6 = arith.constant 0 : index
    %c0_7 = arith.constant 0 : index
    %15 = vector.load %arg1[%c0_6, %c0_7] : memref<16x32xf32, #tpu.memory_space<vmem>>, vector<16x32xf32>
    %cst_8 = arith.constant dense<0.000000e+00> : vector<8x16xf32>
    %16 = tpu.matmul %14, %15, %cst_8 {dimension_numbers = #tpu.dot_dimension_numbers<[1], [1], [0], [0], [0, 0, 1, 0], [], []>, precision = #tpu.contract_precision<fp32>} : vector<8x32xf32>, vector<16x32xf32>, vector<8x16xf32> -> vector<8x16xf32>
    %17 = arith.mulf %6, %8 : vector<8x32xf32>
    %cst_9 = arith.constant dense<0.000000e+00> : vector<8xf32>
    %18 = vector.multi_reduction <add>, %17, %cst_9 [1] : vector<8x32xf32> to vector<8xf32>
    %19 = vector.shape_cast %18 : vector<8xf32> to vector<8x1xf32>
    %cst_10 = arith.constant dense<0.000000e+00> : vector<1xf32>
    %20 = vector.multi_reduction <add>, %19, %cst_10 [0] : vector<8x1xf32> to vector<1xf32>
    %21 = vector.shape_cast %20 : vector<1xf32> to vector<1x1xf32>
    %cst_11 = arith.constant 2.659260e+00 : f32
    %22 = vector.broadcast %cst_11 : f32 to vector<1x1xf32>
    %23 = arith.mulf %22, %21 : vector<1x1xf32>
    %c0_12 = arith.constant 0 : index
    %c0_13 = arith.constant 0 : index
    %24 = vector.load %arg4[%c0_12, %c0_13] : memref<1x1xf32, #tpu.memory_space<vmem>>, vector<1x1xf32>
    %cst_14 = arith.constant dense<0xFF800000> : vector<8xf32>
    %25 = vector.multi_reduction <maximumf>, %12, %cst_14 [1] : vector<8x16xf32> to vector<8xf32>
    %26 = vector.shape_cast %25 : vector<8xf32> to vector<8x1xf32>
    %27 = vector.broadcast %26 : vector<8x1xf32> to vector<8x16xf32>
    %28 = arith.subf %12, %27 : vector<8x16xf32>
    %29 = math.exp %28 : vector<8x16xf32>
    %cst_15 = arith.constant dense<0.000000e+00> : vector<8xf32>
    %30 = vector.multi_reduction <add>, %29, %cst_15 [1] : vector<8x16xf32> to vector<8xf32>
    %31 = vector.shape_cast %30 : vector<8xf32> to vector<8x1xf32>
    %32 = math.log %31 : vector<8x1xf32>
    %33 = arith.addf %26, %32 : vector<8x1xf32>
    %cst_16 = arith.constant dense<0.000000e+00> : vector<1xf32>
    %34 = vector.multi_reduction <add>, %33, %cst_16 [0] : vector<8x1xf32> to vector<1xf32>
    %35 = vector.shape_cast %34 : vector<1xf32> to vector<1x1xf32>
    %cst_17 = arith.constant dense<0xFF800000> : vector<8xf32>
    %36 = vector.multi_reduction <maximumf>, %16, %cst_17 [1] : vector<8x16xf32> to vector<8xf32>
    %37 = vector.shape_cast %36 : vector<8xf32> to vector<8x1xf32>
    %38 = vector.broadcast %37 : vector<8x1xf32> to vector<8x16xf32>
    %39 = arith.subf %16, %38 : vector<8x16xf32>
    %40 = math.exp %39 : vector<8x16xf32>
    %cst_18 = arith.constant dense<0.000000e+00> : vector<8xf32>
    %41 = vector.multi_reduction <add>, %40, %cst_18 [1] : vector<8x16xf32> to vector<8xf32>
    %42 = vector.shape_cast %41 : vector<8xf32> to vector<8x1xf32>
    %43 = math.log %42 : vector<8x1xf32>
    %44 = arith.addf %37, %43 : vector<8x1xf32>
    %cst_19 = arith.constant dense<0.000000e+00> : vector<1xf32>
    %45 = vector.multi_reduction <add>, %44, %cst_19 [0] : vector<8x1xf32> to vector<1xf32>
    %46 = vector.shape_cast %45 : vector<1xf32> to vector<1x1xf32>
    %47 = arith.addf %35, %46 : vector<1x1xf32>
    %cst_20 = arith.constant 2.000000e+00 : f32
    %48 = vector.broadcast %cst_20 : f32 to vector<1x1xf32>
    %49 = arith.mulf %48, %23 : vector<1x1xf32>
    %50 = arith.subf %47, %49 : vector<1x1xf32>
    %51 = arith.addf %24, %50 : vector<1x1xf32>
    %c0_21 = arith.constant 0 : index
    %c0_22 = arith.constant 0 : index
    %52 = vector.load %arg4[%c0_21, %c0_22] : memref<1x1xf32, #tpu.memory_space<vmem>>, vector<1x1xf32>
    tpu.vector_store %arg4[%c0_21, %c0_22], %51 {strides = array<i32>} : memref<1x1xf32, #tpu.memory_space<vmem>>, vector<1x1xf32>,
    %c1_i32 = arith.constant 1 : i32
    %53 = arith.cmpi eq, %arg0, %c1_i32 : i32
    %54 = arith.extui %53 : i1 to i32
    %c0_i32_23 = arith.constant 0 : i32
    %55 = arith.cmpi ne, %54, %c0_i32_23 : i32
    scf.if %55 {
      %c0_24 = arith.constant 0 : index
      %c0_25 = arith.constant 0 : index
      %56 = vector.load %arg4[%c0_24, %c0_25] : memref<1x1xf32, #tpu.memory_space<vmem>>, vector<1x1xf32>
      %cst_26 = arith.constant 3.125000e-02 : f32
      %57 = vector.broadcast %cst_26 : f32 to vector<1x1xf32>
      %58 = arith.mulf %56, %57 : vector<1x1xf32>
      %c0_27 = arith.constant 0 : index
      %c0_28 = arith.constant 0 : index
      %59 = vector.load %arg3[%c0_27, %c0_28] : memref<1x1xf32, #tpu.memory_space<vmem>>, vector<1x1xf32>
      tpu.vector_store %arg3[%c0_27, %c0_28], %58 {strides = array<i32>} : memref<1x1xf32, #tpu.memory_space<vmem>>, vector<1x1xf32>,
    } else {
    }
    return
  }
  func.func @transform_0(%arg0: i32) -> (i32, i32) {
    %c0_i32 = arith.constant 0 : i32
    %c0_i32_0 = arith.constant 0 : i32
    %c0_i32_1 = arith.constant 0 : i32
    return %c0_i32, %c0_i32_0 : i32, i32
  }
  func.func @transform_1(%arg0: i32) -> (i32, i32) {
    %c0_i32 = arith.constant 0 : i32
    %c0_i32_0 = arith.constant 0 : i32
    %c0_i32_1 = arith.constant 0 : i32
    return %c0_i32, %c0_i32_0 : i32, i32
  }
  func.func @transform_2(%arg0: i32) -> (i32, i32) {
    %c0_i32 = arith.constant 0 : i32
    %c0_i32_0 = arith.constant 0 : i32
    %c0_i32_1 = arith.constant 0 : i32
    return %c0_i32, %c0_i32_0 : i32, i32
  }
}

</mosaic_0001>

<bundles_post_ra>
// kernel: tpu_custom_call.1
= control target key start
LH: loop header
LB: loop body
LE: loop exit
PB: predicated region body
PF: predicated region fallthrough
CT: control target
= control target key end

     0   :  { %7 = vsyncpa [#allocation4], 0  ;;  %s878_s0 = inlined_call_operand.hbm [shape: f32[16,32], index: 0, kind: input, shape index: {}]   ;;  %s879_s1 = inlined_call_operand.hbm [shape: f32[16,32], index: 1, kind: input, shape index: {}]   ;;  %s880_s2 = inlined_call_operand.hbm [shape: f32[1,1], index: 2, kind: output, shape index: {}]  }
   0x1   :  { %8 = vsyncpa [#allocation7], 0 }
   0x2   :  { %9 = vsyncpa [#allocation5], 0  ;;  %s812_s9 = smov 0  }
   0x3 LB: > { %s94_s12 = sshll.u32 %s878_s0, 4  ;;  %s821_s13 = sadd.s32 4294967295, %s789_s9   ;;  %s789_s9 = sphi %s812_s9, %s15_s9   ;;  %s95_s12 = int_to_ptr.hbm [resolvable:$true] %s94_s12 }
   0x4   : > { %p623_p0 = scmp.ge.s32.totalorder %s789_s9, 1  ;;  %p83_p1 = scmp.lt.s32.totalorder %s789_s9, 3 }
   0x5   : > { %p624_p2 = scmp.ne.s32.totalorder %s821_s13, 0  ;;  %p655_p3 = scmp.eq.s32.totalorder %s821_s13, 0 }
   0x6   : > { %p827_p4 = pnand %p623_p0, %p83_p1  ;;  %s791_s15 = smov [#allocation3]  }
   0x7   : > { %s96_s16 = sshll.u32 %s791_s15, 4  ;;  %s108_s19 = sshll.u32 %s879_s1, 4  ;;  %s97_s16 = int_to_ptr.vmem [resolvable:$true] %s96_s16  ;;  %s109_s19 = int_to_ptr.hbm [resolvable:$true] %s108_s19 }
   0x8   : > { %p648_p5 = pneg %p827_p4  ;;  %s792_s20 = smov [#allocation6]  }
   0x9   : > { %s110_s21 = sshll.u32 %s792_s20, 4  ;;  %s793_s22 = smov 128   ;;  %s111_s21 = int_to_ptr.vmem [resolvable:$true] %s110_s21 }
   0xa   : > { %p649_p6 = pnand %p655_p3, %p648_p5  ;;  %s794_s23 = smov 8  }
   0xb   : > { %126 = sbr.rel (%p827_p4) target bundleno = 483 (0x1e3), region = 28 }
   0xc   : > { %651 = dma.hbm_to_vmem [thread:$0]  (!%p649_p6), %s95_s12, 256, %s97_s16, [#allocation4], %s793_s22, %s793_s22, %s794_s23  }
   0xd   : > { %654 = dma.hbm_to_vmem [thread:$0]  (!%p649_p6), %s109_s19, 256, %s111_s21, [#allocation7], %s793_s22, %s793_s22, %s794_s23  }
  0x10   : > { %776 = dma.done.wait (%p655_p3), [#allocation4], 256  }
  0x11   : > { %778 = vsyncadd (%p655_p3), [#allocation4], 4294967040 }
  0x12   : > { %780 = dma.done.wait (%p655_p3), [#allocation7], 256  }
  0x13   : > { %782 = vsyncadd (%p655_p3), [#allocation7], 4294967040  ;;  %147 = sbr.rel (%p624_p2) target bundleno = 26 (0x1a), region = 40 }
  0x18   : > { %vm148_vm0 = vcmask 0   ;;  %v795_v0 = vmov 0.0  }
  0x19   : > { %149 = vst.msk [vmem:[#allocation2] sm:$0x1] %vm148_vm0, %v795_v0 }
  0x1a PF: > { %v157_v1 = vld [vmem:[#allocation6 + $0x8] sm:$0xff]  ;;  %vm158_vm1 = vcmask 261120   ;;  %v156_v2 = vld [vmem:[#allocation6] sm:$0xff]  ;;  %s630_s24 = sshll.u32 %s821_s13, 3  ;;  %v329_v3 = vld [vmem:[#allocation3 + $0x8] sm:$0xff]  ;;  %vm510_vm2 = vcmask 130048  }
  0x1b   : > { %v166_v4 = vsel %vm158_vm1, %v157_v1, 0  ;;  %v163_v5 = vsel %vm158_vm1, %v156_v2, 0  ;;  %v337_v6 = vsel %vm158_vm1, %v329_v3, 0  ;;  %v328_v7 = vld [vmem:[#allocation3] sm:$0xff]  ;;  %s151_s25 = scalar_lea.vmem [#allocation3], %s630_s24  ;;  %s153_s26 = scalar_lea.vmem [#allocation6], %s630_s24 }
  0x1c   : > { %v182_v8 = vand.u32 4294901760, %v166_v4  ;;  %v184_v9 = vand.u32 4294901760, %v163_v5  ;;  %v854_v10 = vld [vmem:[%s151_s25] sm:$0xff]  ;;  %v353_v12 = vand.u32 4294901760, %v337_v6  ;;  %v334_v13 = vsel %vm158_vm1, %v328_v7, 0  ;;  %p631_p7 = scmp.ne.s32.totalorder %s821_s13, 1 }
  0x1d   : > { %v856_v11 = vld [vmem:[%s153_s26] sm:$0xff]  ;;  %v155_v14 = vmul.f32 2.65926, %v854_v10  ;;  %v355_v16 = vand.u32 4294901760, %v334_v13  ;;  %vm551_vm3 = vcmask 0  }
  0x1e   : > { %v327_v15 = vmul.f32 2.65926, %v856_v11  ;;  %v210_v17 = vsub.f32 %v166_v4, %v182_v8  ;;  %267 = vmatpush.xpose.msra.mxu3 %v182_v8  ;;  %183 = vmatpush.xpose.msra.mxu0 %v182_v8  ;;  %v216_v18 = vsub.f32 %v163_v5, %v184_v9  ;;  %v381_v19 = vsub.f32 %v337_v6, %v353_v12 }
  0x1f   : > { %v160_v20 = vsel %vm158_vm1, %v155_v14, 0  ;;  %v387_v21 = vsub.f32 %v334_v13, %v355_v16  ;;  %v498_v5 = vmul.f32 %v856_v11, %v854_v10 }
  0x20   : > { %v331_v22 = vsel %vm158_vm1, %v327_v15, 0  ;;  %242 = vmatpush.xpose.msra.mxu2 %v210_v17  ;;  %v211_v23 = vand.u32 4294901760, %v210_v17  ;;  %v186_v24 = vand.u32 4294901760, %v160_v20  ;;  %v217_v25 = vand.u32 4294901760, %v216_v18 }
  0x21   : > { %v382_v26 = vand.u32 4294901760, %v381_v19  ;;  %v388_v27 = vand.u32 4294901760, %v387_v21  ;;  %v357_v28 = vand.u32 4294901760, %v331_v22  ;;  %v499_v6 = vsel %vm158_vm1, %v498_v5, 0.0 }
  0x22   : > { %v212_v29 = vsub.f32 %v210_v17, %v211_v23  ;;  %269 = vmatpush.xpose.msra.mxu3 %v184_v9  ;;  %185 = vmatpush.xpose.msra.mxu0 %v184_v9  ;;  %v187_v30 = vsub.f32 %v160_v20, %v186_v24  ;;  %v218_v31 = vsub.f32 %v216_v18, %v217_v25 }
  0x23   : > { %v383_v32 = vsub.f32 %v381_v19, %v382_v26  ;;  %v389_v33 = vsub.f32 %v387_v21, %v388_v27  ;;  %v358_v34 = vsub.f32 %v331_v22, %v357_v28  ;;  %500 = vadd.xlane.f32.xlu2 %v499_v6 }
  0x24   : > { %v213_v35 = vand.u32 4294901760, %v212_v29  ;;  %245 = vmatpush.xpose.msra.mxu2 %v216_v18  ;;  %v188_v36 = vand.u32 4294901760, %v187_v30  ;;  %v219_v40 = vand.u32 4294901760, %v218_v31 }
  0x25   : > { %v384_v37 = vand.u32 4294901760, %v383_v32  ;;  %v359_v38 = vand.u32 4294901760, %v358_v34  ;;  %v390_v41 = vand.u32 4294901760, %v389_v33 }
  0x26   : > { %294 = vmatpush.xpose.msrb.mxu0 %v211_v23  ;;  %214 = vmatpush.xpose.msra.mxu1 %v213_v35  ;;  %v189_v39 = vsub.f32 %v187_v30, %v188_v36 }
  0x27   : > { %273 = vmatmul.f32.vlgmr.msra.gmra.mxu3 %v188_v36  ;;  %248 = vmatmul.f32.vlgmr.msra.gmra.mxu2 %v187_v30  ;;  %v360_v42 = vsub.f32 %v358_v34, %v359_v38 }
  0x28   : > { %354 = vmatpush.xpose.msrb.mxu2 %v353_v12  ;;  %385 = vmatpush.xpose.msrb.mxu3 %v384_v37  ;;  %v190_v43 = vand.u32 4294901760, %v189_v39 }
  0x29   : > { %v361_v44 = vand.u32 4294901760, %v360_v42 }
  0x2a   : > { %298 = vmatpush.xpose.msrb.mxu0 %v217_v25  ;;  %220 = vmatpush.xpose.msra.mxu1 %v219_v40 }
  0x2b   : > { %191 = vmatmul.f32.vlgmr.msra.gmra.mxu0 %v190_v43 }
  0x2c   : > { %356 = vmatpush.xpose.msrb.mxu2 %v355_v16  ;;  %391 = vmatpush.xpose.msrb.mxu3 %v390_v41 }
  0x2d   : > { %222 = vmatmul.f32.vlgmr.msra.gmra.mxu1 %v186_v24 }
  0x2e   : > { %319 = vmatpush.xpose.msrb.mxu1 %v182_v8  ;;  %413 = vmatpush.xpose.msra.mxu0 %v381_v19 }
  0x2f   : > { %393 = vmatmul.f32.vlgmr.msrb.gmra.mxu3 %v357_v28  ;;  %362 = vmatmul.f32.vlgmr.msrb.gmra.mxu2 %v361_v44 }
  0x30   : > { %465 = vmatpush.xpose.msra.mxu2 %v382_v26  ;;  %490 = vmatpush.xpose.msra.mxu3 %v353_v12 }
  0x32   : > { %321 = vmatpush.xpose.msrb.mxu1 %v184_v9  ;;  %416 = vmatpush.xpose.msra.mxu0 %v387_v21 }
  0x33   : > { %300 = vmatmul.f32.vlgmr.msrb.gmra.mxu0 %v186_v24 }
  0x34   : > { %469 = vmatpush.xpose.msra.mxu2 %v388_v27  ;;  %492 = vmatpush.xpose.msra.mxu3 %v355_v16 }
  0x35   : > { %323 = vmatmul.f32.vlgmr.msrb.gmra.mxu1 %v186_v24 }
  0x36   : > { %438 = vmatpush.xpose.msra.mxu1 %v353_v12 }
  0x37   : > { %494 = vmatmul.f32.vlgmr.msra.gmra.mxu3 %v357_v28  ;;  %471 = vmatmul.f32.vlgmr.msra.gmra.mxu2 %v357_v28 }
  0x3a   : > { %440 = vmatpush.xpose.msra.mxu1 %v355_v16 }
  0x3b   : > { %419 = vmatmul.f32.vlgmr.msra.gmra.mxu0 %v358_v34 }
  0x3d   : > { %444 = vmatmul.f32.vlgmr.msra.gmra.mxu1 %v359_v38 }
  0x96   : > { %v501_v11 = vpop.xlane.xlu2 %500 }
  0x97   : > { %v502_v21 = vrot.slane %v501_v11, 4 }
  0x99   : > { %v503_v24 = vadd.f32 %v502_v21, %v501_v11 }
  0x9b   : > { %v504_v26 = vrot.slane %v503_v24, 2 }
  0x9d   : > { %v505_v30 = vadd.f32 %v504_v26, %v503_v24 }
  0x9f   : > { %v506_v34 = vrot.slane %v505_v30, 1 }
  0xa1   : > { %v507_v38 = vadd.f32 %v506_v34, %v505_v30 }
  0xa3   : > { %v508_v42 = vmul.f32 2.65926, %v507_v38 }
  0xa8   : > { %v192_v45 = vpop.f32.mrf.mxu0 }
  0xaa   : > { %v274_v46 = vpop.f32.mrf.mxu3  ;;  %v223_v47 = vpop.f32.mrf.mxu1 }
  0xab   : > { %v249_v48 = vpop.f32.mrf.mxu2  ;;  %v224_v49 = vadd.f32 %v223_v47, %v192_v45  ;;  %v509_v47 = vld [vmem:[#allocation2] sm:$0x1] }
  0xad   : > { %v250_v50 = vadd.f32 %v249_v48, %v224_v49 }
  0xaf   : > { %v275_v51 = vadd.f32 %v274_v46, %v250_v50  ;;  %v548_v46 = vmul.f32 2.0, %v508_v42 }
  0xb0   : > { %v301_v52 = vpop.f32.mrf.mxu0 }
  0xb1   : > { %v302_v53 = vadd.f32 %v301_v52, %v275_v51 }
  0xb2   : > { %v394_v54 = vpop.f32.mrf.mxu3  ;;  %v324_v55 = vpop.f32.mrf.mxu1 }
  0xb3   : > { %v363_v56 = vpop.f32.mrf.mxu2  ;;  %v325_v57 = vadd.f32 %v324_v55, %v302_v53 }
  0xb4   : > { %v395_v58 = vadd.f32 %v394_v54, %v363_v56 }
  0xb5   : > { %v511_v59 = vsel %vm510_vm2, %v325_v57, -inf }
  0xb6   : > { %512 = vmax.xlane.f32.xlu0 %v511_v59 }
  0xb8   : > { %v420_v60 = vpop.f32.mrf.mxu0 }
  0xb9   : > { %v421_v61 = vadd.f32 %v420_v60, %v395_v58 }
  0xba   : > { %v445_v62 = vpop.f32.mrf.mxu1  ;;  %v495_v1 = vpop.f32.mrf.mxu3 }
  0xbb   : > { %v472_v63 = vpop.f32.mrf.mxu2  ;;  %v446_v0 = vadd.f32 %v445_v62, %v421_v61 }
  0xbd   : > { %v473_v2 = vadd.f32 %v472_v63, %v446_v0 }
  0xbf   : > { %v496_v3 = vadd.f32 %v495_v1, %v473_v2 }
  0xc1   : > { %v529_v4 = vsel %vm510_vm2, %v496_v3, -inf }
  0xc2   : > { %530 = vmax.xlane.f32.xlu0 %v529_v4 }
 0x129   : > { %v513_v7 = vpop.xlane.xlu0 %512 }
 0x12a   : > { %v514_v8 = vsub.f32 %v325_v57, %v513_v7 }
 0x12c   : > { %v515_v9 = vmul.f32 1.442695, %v514_v8 }
 0x12e   : > { %675 = vpow2.f32 %v515_v9 }
 0x134   : > { %v676_v12 = vpop.eup %675 }
 0x135   : > { %v531_v13 = vpop.xlane.xlu0 %530  ;;  %v517_v14 = vsel %vm510_vm2, %v676_v12, 0.0 }
 0x136   : > { %v532_v15 = vsub.f32 %v496_v3, %v531_v13  ;;  %518 = vadd.xlane.f32.xlu1 %v517_v14 }
 0x138   : > { %v533_v16 = vmul.f32 1.442695, %v532_v15 }
 0x13a   : > { %677 = vpow2.f32 %v533_v16 }
 0x140   : > { %v678_v17 = vpop.eup %677 }
 0x141   : > { %v535_v18 = vsel %vm510_vm2, %v678_v17, 0.0 }
 0x142   : > { %536 = vadd.xlane.f32.xlu1 %v535_v18 }
 0x1a9   : > { %v519_v10 = vpop.xlane.xlu1 %518 }
 0x1aa   : > { %679 = vlog2.f32 %v519_v10 }
 0x1b0   : > { %v680_v19 = vpop.eup %679 }
 0x1b1   : > { %v521_v20 = vmul.f32 0.6931472, %v680_v19 }
 0x1b3   : > { %v522_v22 = vadd.f32 %v521_v20, %v513_v7 }
 0x1b5   : > { %v537_v23 = vpop.xlane.xlu1 %536  ;;  %v523_v25 = vrot.slane %v522_v22, 4 }
 0x1b6   : > { %681 = vlog2.f32 %v537_v23 }
 0x1b7   : > { %v524_v27 = vadd.f32 %v523_v25, %v522_v22 }
 0x1b9   : > { %v525_v31 = vrot.slane %v524_v27, 2 }
 0x1bb   : > { %v526_v35 = vadd.f32 %v525_v31, %v524_v27 }
 0x1bc   : > { %v682_v28 = vpop.eup %681 }
 0x1bd   : > { %v539_v29 = vmul.f32 0.6931472, %v682_v28  ;;  %v527_v39 = vrot.slane %v526_v35, 1 }
 0x1bf   : > { %v540_v32 = vadd.f32 %v539_v29, %v531_v13  ;;  %v528_v43 = vadd.f32 %v527_v39, %v526_v35 }
 0x1c1   : > { %v541_v33 = vrot.slane %v540_v32, 4 }
 0x1c3   : > { %v542_v36 = vadd.f32 %v541_v33, %v540_v32 }
 0x1c5   : > { %v543_v37 = vrot.slane %v542_v36, 2 }
 0x1c7   : > { %v544_v40 = vadd.f32 %v543_v37, %v542_v36 }
 0x1c9   : > { %v545_v41 = vrot.slane %v544_v40, 1 }
 0x1cb   : > { %v546_v44 = vadd.f32 %v545_v41, %v544_v40 }
 0x1cd   : > { %v547_v45 = vadd.f32 %v546_v44, %v528_v43 }
 0x1cf   : > { %v549_v48 = vsub.f32 %v547_v45, %v548_v46  ;;  %556 = sbr.rel (%p631_p7) target bundleno = 478 (0x1de), region = 44 }
 0x1d1   : > { %v550_v49 = vadd.f32 %v549_v48, %v509_v47 }
 0x1d3   : > { %552 = vst.msk [vmem:[#allocation2] sm:$0x1] %vm551_vm3, %v550_v49 }
 0x1da   : > { %v557_v50 = vld [vmem:[#allocation2] sm:$0x1] }
 0x1db   : > { %v558_v51 = vmul.f32 0.03125, %v557_v50 }
 0x1dd   : > { %559 = vst.msk [vmem:[#allocation8] sm:$0x1] %vm551_vm3, %v558_v51 }
 0x1de PF: > { %p659_p8 = scmp.eq.s32.totalorder %s821_s13, 1  ;;  %s796_s27 = smov [#allocation8]  }
 0x1df   : > { %s566_s28 = sshll.u32 %s796_s27, 4  ;;  %s568_s3 = sshll.u32 %s880_s2, 4  ;;  %s567_s28 = int_to_ptr.vmem [resolvable:$true] %s566_s28  ;;  %s569_s3 = int_to_ptr.hbm [resolvable:$true] %s568_s3 }
 0x1e0   : > { %645 = dma.vmem_to_hbm [thread:$0]  (%p659_p8), %s567_s28, 16, %s569_s3, [#allocation5]  }
 0x1e1   : > { %784 = dma.done.wait (%p659_p8), [#allocation5], 16  }
 0x1e2   : > { %786 = vsyncadd (%p659_p8), [#allocation5], 4294967280 }
 0x1e3 PF: > { %s15_s9 = sadd.s32 1, %s789_s9  }
 0x1e4   : > { %p12_p9 = scmp.ge.s32.totalorder %s15_s9, 4  }
 0x1e6   :  { %14 = sbr.rel (!%p12_p9) target bundleno = 3 (0x3), region = 71 }
 0x1eb   :  { %582 = vsyncpa [#allocation4], 1 }
 0x1ec   :  { %584 = vsyncpa [#allocation4 + $0x1], 1 }
 0x1ed   :  { %585 = vsyncpa [#allocation7], 1 }
 0x1ee   :  { %586 = vsyncpa [#allocation5], 1 }
 0x1ef   :  { %588 = vsyncpa [#allocation5 + $0x1], 1 }

</bundles_post_ra>
